<compile_context>
chip_gen: v7x
topology: tpu7x:2x2x1
jax: 0.10.0
libtpu: 0.0.40
codegen_flags: <defaults>
</compile_context>

<pallas_src>
import functools

import jax
import jax.numpy as jnp
from jax.experimental import pallas as pl
from jax.experimental.pallas import tpu as pltpu

L = 5            # sequence length after x.view(-1, 1, 5)
K = 3            # conv kernel size
C_OUT = 16       # conv out channels
F0 = C_OUT * L   # 80 = flattened conv output width
H1 = 64          # fc1 hidden
H2 = 4           # fc2 output

TILE_B_MAX = 16384  # batch tile (multiple of 256/128 -> clean MXU cadence, tiny VMEM)


def cnn_kernel(x_ref, wc_ref, bc_ref, w1_ref, b1_ref, w2_ref, b2_ref, out_ref):
    # x_ref:  (TB, 5)   bf16  streamed batch tile of the raw input
    # wc_ref: (5, 80)   bf16  Conv1d folded into a dense matmul (cols = c*5 + l)
    # bc_ref: (1, 80)   f32   conv bias repeated per output position
    # w1_ref: (80, 64)  bf16  b1_ref: (1, 64) f32
    # w2_ref: (64, 4)   bf16  b2_ref: (1, 4)  f32
    x = x_ref[...]
    # Conv1d(1,16,k=3,pad=1) as a single dense matmul; f32 MXU accumulation.
    h0 = jnp.dot(x, wc_ref[...], preferred_element_type=jnp.float32) + bc_ref[...]
    h0 = jnp.maximum(h0, 0.0)
    # fc1 + ReLU
    h1 = jnp.dot(h0.astype(jnp.bfloat16), w1_ref[...],
                 preferred_element_type=jnp.float32) + b1_ref[...]
    h1 = jnp.maximum(h1, 0.0)
    # dropout: eval-mode identity
    out_ref[...] = jnp.dot(h1.astype(jnp.bfloat16), w2_ref[...],
                           preferred_element_type=jnp.float32) + b2_ref[...]


def init_params(key):
    k1, k2, k3, k4, k5, k6 = jax.random.split(key, 6)
    # Conv1d(1, 16, 3): weight (16, 1, 3), bias (16,)
    w_conv = jax.random.normal(k1, (C_OUT, 1, K), jnp.float32) * 0.1
    b_conv = jax.random.normal(k2, (C_OUT,), jnp.float32) * 0.1
    # Linear(80, 64): weight (64, 80), bias (64,)
    w1 = jax.random.normal(k3, (H1, F0), jnp.float32) * 0.1
    b1 = jax.random.normal(k4, (H1,), jnp.float32) * 0.1
    # Linear(64, 4): weight (4, 64), bias (4,)
    w2 = jax.random.normal(k5, (H2, H1), jnp.float32) * 0.1
    b2 = jax.random.normal(k6, (H2,), jnp.float32) * 0.1
    return w_conv, b_conv, w1, b1, w2, b2


def prepare_params(params):
    """One-time (hoisted) parameter prep: fold the conv + its zero padding into a
    dense (5, 80) matmul weight, transpose the linears, cast weights to bf16."""
    w_conv, b_conv, w1, b1, w2, b2 = params
    w = w_conv[:, 0, :]                                   # (C_OUT, K)
    # wc[i, c*L + l] = w[c, i + 1 - l]  if 0 <= i+1-l < K else 0
    i_idx = jnp.arange(L)[:, None, None]                  # input position
    c_idx = jnp.arange(C_OUT)[None, :, None]              # channel
    l_idx = jnp.arange(L)[None, None, :]                  # output position
    k_idx = i_idx + 1 - l_idx                             # tap index
    valid = (k_idx >= 0) & (k_idx < K)
    wc = jnp.where(valid, w[c_idx, jnp.clip(k_idx, 0, K - 1)], 0.0)   # (L, C_OUT, L)
    wc = wc.reshape(L, F0)
    bconv_big = jnp.repeat(b_conv, L)[None, :]            # (1, 80), channel-major
    return (wc.astype(jnp.bfloat16),
            bconv_big.astype(jnp.float32),
            w1.T.astype(jnp.bfloat16), b1[None, :].astype(jnp.float32),
            w2.T.astype(jnp.bfloat16), b2[None, :].astype(jnp.float32))


def _choose_tile_b(batch):
    if batch >= TILE_B_MAX:
        return TILE_B_MAX
    return max(8, ((batch + 7) // 8) * 8)   # sublane-aligned small-batch tile


@jax.jit
def _cnn_forward_impl(x2d, prepared):
    wc, bconv, w1t, b1r, w2t, b2r = prepared
    batch = x2d.shape[0]
    tile_b = _choose_tile_b(batch)
    b_pad = pl.cdiv(batch, tile_b) * tile_b
    if b_pad != batch:
        x2d = jnp.pad(x2d, ((0, b_pad - batch), (0, 0)))
    xb = x2d.astype(jnp.bfloat16)                         # halve streamed input bytes

    const2d = lambda i: (0, 0)                            # weights stay VMEM-resident
    out = pl.pallas_call(
        cnn_kernel,
        out_shape=jax.ShapeDtypeStruct((b_pad, H2), jnp.float32),
        grid_spec=pltpu.PrefetchScalarGridSpec(
            num_scalar_prefetch=0,
            grid=(b_pad // tile_b,),
            in_specs=[
                pl.BlockSpec((tile_b, L), lambda i: (i, 0)),   # streamed input tile
                pl.BlockSpec((L, F0), const2d),                # folded conv weight
                pl.BlockSpec((1, F0), const2d),                # conv bias
                pl.BlockSpec((F0, H1), const2d),               # fc1 weight^T
                pl.BlockSpec((1, H1), const2d),                # fc1 bias
                pl.BlockSpec((H1, H2), const2d),               # fc2 weight^T
                pl.BlockSpec((1, H2), const2d),                # fc2 bias
            ],
            out_specs=pl.BlockSpec((tile_b, H2), lambda i: (i, 0)),
        ),
        compiler_params=pltpu.CompilerParams(
            dimension_semantics=("parallel",),                 # megacore on v7x
            vmem_limit_bytes=32 * 1024 * 1024,                 # safe on v5e/v6e/v7x
        ),
    )(xb, wc, bconv, w1t, b1r, w2t, b2r)
    return out[:batch]


def cnn_forward(x, prepared):
    x2d = x.reshape(-1, L)                                # x.view(-1, 1, 5) -> (B, 5)
    return _cnn_forward_impl(x2d, prepared)


def cnn_reference(x, params):
    # Pure-JAX f32 reference mirroring the PyTorch forward (dropout in eval mode).
    w_conv, b_conv, w1, b1, w2, b2 = params
    x2d = x.reshape(-1, L).astype(jnp.float32)
    x_pad = jnp.pad(x2d, ((0, 0), (1, 1)))
    idx = jnp.arange(L)[:, None] + jnp.arange(K)[None, :]
    windows = x_pad[:, idx]                                # (B, L, K)
    conv = jnp.einsum('blk,ck->bcl', windows, w_conv[:, 0, :]) + b_conv[None, :, None]
    h = jnp.maximum(conv, 0.0).reshape(x2d.shape[0], -1)   # (B, 80) channel-major
    h1 = jnp.maximum(h @ w1.T + b1, 0.0)
    return h1 @ w2.T + b2


if __name__ == "__main__":
    key = jax.random.PRNGKey(0)
    pkey, xkey, xkey2 = jax.random.split(key, 3)
    params = init_params(pkey)
    prepared = prepare_params(params)     # hoisted: done once, not per forward

    # Small input consistent with forward's x.view(-1, 1, 5): batch=8, 5 features.
    x = jax.random.normal(xkey, (8, 5), jnp.float32)
    out = jax.block_until_ready(cnn_forward(x, prepared))
    ref = cnn_reference(x, params)
    assert out.shape == (8, H2)
    assert jnp.allclose(out, ref, atol=5e-2, rtol=5e-2), "mismatch vs reference (B=8)"

    # Larger, non-tile-multiple batch to exercise the padded path.
    x_big = jax.random.normal(xkey2, (600, 5), jnp.float32)
    out_big = jax.block_until_ready(cnn_forward(x_big, prepared))
    ref_big = cnn_reference(x_big, params)
    assert out_big.shape == (600, H2)
    assert jnp.allclose(out_big, ref_big, atol=5e-2, rtol=5e-2), "mismatch vs reference (B=600)"

    print("KERNEL_OK")
</pallas_src>

<mosaic_0001>
module attributes {stable_mosaic.version = 11 : i64} {
  func.func @cnn_kernel(%arg0: i32, %arg1: memref<8x5xbf16, #tpu.memory_space<vmem>>, %arg2: memref<5x80xbf16, #tpu.memory_space<vmem>>, %arg3: memref<1x80xf32, #tpu.memory_space<vmem>>, %arg4: memref<80x64xbf16, #tpu.memory_space<vmem>>, %arg5: memref<1x64xf32, #tpu.memory_space<vmem>>, %arg6: memref<64x4xbf16, #tpu.memory_space<vmem>>, %arg7: memref<1x4xf32, #tpu.memory_space<vmem>>, %arg8: memref<8x4xf32, #tpu.memory_space<vmem>>) attributes {dimension_semantics = [#tpu.dimension_semantics<parallel>], iteration_bounds = array<i64: 1>, scalar_prefetch = 0 : i64, scratch_operands = 0 : i64, tpu.core_type = #tpu.core_type<tc>, window_params = [{transform_indices = @transform_0, window_bounds = array<i64: 8, 5>}, {pipeline_mode = #tpu.pipeline_mode<synchronous>, transform_indices = @transform_1, window_bounds = array<i64: 5, 80>}, {pipeline_mode = #tpu.pipeline_mode<synchronous>, transform_indices = @transform_2, window_bounds = array<i64: 1, 80>}, {pipeline_mode = #tpu.pipeline_mode<synchronous>, transform_indices = @transform_3, window_bounds = array<i64: 80, 64>}, {pipeline_mode = #tpu.pipeline_mode<synchronous>, transform_indices = @transform_4, window_bounds = array<i64: 1, 64>}, {pipeline_mode = #tpu.pipeline_mode<synchronous>, transform_indices = @transform_5, window_bounds = array<i64: 64, 4>}, {pipeline_mode = #tpu.pipeline_mode<synchronous>, transform_indices = @transform_6, window_bounds = array<i64: 1, 4>}, {transform_indices = @transform_7, window_bounds = array<i64: 8, 4>}]} {
    %c0 = arith.constant 0 : index
    %c0_0 = arith.constant 0 : index
    %0 = vector.load %arg1[%c0, %c0_0] : memref<8x5xbf16, #tpu.memory_space<vmem>>, vector<8x5xbf16>
    %c0_1 = arith.constant 0 : index
    %c0_2 = arith.constant 0 : index
    %1 = vector.load %arg2[%c0_1, %c0_2] : memref<5x80xbf16, #tpu.memory_space<vmem>>, vector<5x80xbf16>
    %cst = arith.constant dense<0.000000e+00> : vector<8x80xf32>
    %2 = tpu.matmul %0, %1, %cst {dimension_numbers = #tpu.dot_dimension_numbers<[1], [0], [0], [1], [0, 0, 1, 1], [], []>} : vector<8x5xbf16>, vector<5x80xbf16>, vector<8x80xf32> -> vector<8x80xf32>
    %c0_3 = arith.constant 0 : index
    %c0_4 = arith.constant 0 : index
    %3 = vector.load %arg3[%c0_3, %c0_4] : memref<1x80xf32, #tpu.memory_space<vmem>>, vector<1x80xf32>
    %4 = vector.broadcast %3 : vector<1x80xf32> to vector<8x80xf32>
    %5 = arith.addf %2, %4 : vector<8x80xf32>
    %cst_5 = arith.constant 0.000000e+00 : f32
    %6 = vector.broadcast %cst_5 : f32 to vector<8x80xf32>
    %7 = arith.maximumf %5, %6 : vector<8x80xf32>
    %8 = arith.truncf %7 : vector<8x80xf32> to vector<8x80xbf16>
    %c0_6 = arith.constant 0 : index
    %c0_7 = arith.constant 0 : index
    %9 = vector.load %arg4[%c0_6, %c0_7] : memref<80x64xbf16, #tpu.memory_space<vmem>>, vector<80x64xbf16>
    %cst_8 = arith.constant dense<0.000000e+00> : vector<8x64xf32>
    %10 = tpu.matmul %8, %9, %cst_8 {dimension_numbers = #tpu.dot_dimension_numbers<[1], [0], [0], [1], [0, 0, 1, 1], [], []>} : vector<8x80xbf16>, vector<80x64xbf16>, vector<8x64xf32> -> vector<8x64xf32>
    %c0_9 = arith.constant 0 : index
    %c0_10 = arith.constant 0 : index
    %11 = vector.load %arg5[%c0_9, %c0_10] : memref<1x64xf32, #tpu.memory_space<vmem>>, vector<1x64xf32>
    %12 = vector.broadcast %11 : vector<1x64xf32> to vector<8x64xf32>
    %13 = arith.addf %10, %12 : vector<8x64xf32>
    %cst_11 = arith.constant 0.000000e+00 : f32
    %14 = vector.broadcast %cst_11 : f32 to vector<8x64xf32>
    %15 = arith.maximumf %13, %14 : vector<8x64xf32>
    %16 = arith.truncf %15 : vector<8x64xf32> to vector<8x64xbf16>
    %c0_12 = arith.constant 0 : index
    %c0_13 = arith.constant 0 : index
    %17 = vector.load %arg6[%c0_12, %c0_13] : memref<64x4xbf16, #tpu.memory_space<vmem>>, vector<64x4xbf16>
    %cst_14 = arith.constant dense<0.000000e+00> : vector<8x4xf32>
    %18 = tpu.matmul %16, %17, %cst_14 {dimension_numbers = #tpu.dot_dimension_numbers<[1], [0], [0], [1], [0, 0, 1, 1], [], []>} : vector<8x64xbf16>, vector<64x4xbf16>, vector<8x4xf32> -> vector<8x4xf32>
    %c0_15 = arith.constant 0 : index
    %c0_16 = arith.constant 0 : index
    %19 = vector.load %arg7[%c0_15, %c0_16] : memref<1x4xf32, #tpu.memory_space<vmem>>, vector<1x4xf32>
    %20 = vector.broadcast %19 : vector<1x4xf32> to vector<8x4xf32>
    %21 = arith.addf %18, %20 : vector<8x4xf32>
    %c0_17 = arith.constant 0 : index
    %c0_18 = arith.constant 0 : index
    %22 = vector.load %arg8[%c0_17, %c0_18] : memref<8x4xf32, #tpu.memory_space<vmem>>, vector<8x4xf32>
    tpu.vector_store %arg8[%c0_17, %c0_18], %21 {strides = array<i32>} : memref<8x4xf32, #tpu.memory_space<vmem>>, vector<8x4xf32>,
    return
  }
  func.func @transform_0(%arg0: i32) -> (i32, i32) {
    %c0_i32 = arith.constant 0 : i32
    %c0_i32_0 = arith.constant 0 : i32
    return %arg0, %c0_i32 : i32, i32
  }
  func.func @transform_1(%arg0: i32) -> (i32, i32) {
    %c0_i32 = arith.constant 0 : i32
    %c0_i32_0 = arith.constant 0 : i32
    %c0_i32_1 = arith.constant 0 : i32
    return %c0_i32, %c0_i32_0 : i32, i32
  }
  func.func @transform_2(%arg0: i32) -> (i32, i32) {
    %c0_i32 = arith.constant 0 : i32
    %c0_i32_0 = arith.constant 0 : i32
    %c0_i32_1 = arith.constant 0 : i32
    return %c0_i32, %c0_i32_0 : i32, i32
  }
  func.func @transform_3(%arg0: i32) -> (i32, i32) {
    %c0_i32 = arith.constant 0 : i32
    %c0_i32_0 = arith.constant 0 : i32
    %c0_i32_1 = arith.constant 0 : i32
    return %c0_i32, %c0_i32_0 : i32, i32
  }
  func.func @transform_4(%arg0: i32) -> (i32, i32) {
    %c0_i32 = arith.constant 0 : i32
    %c0_i32_0 = arith.constant 0 : i32
    %c0_i32_1 = arith.constant 0 : i32
    return %c0_i32, %c0_i32_0 : i32, i32
  }
  func.func @transform_5(%arg0: i32) -> (i32, i32) {
    %c0_i32 = arith.constant 0 : i32
    %c0_i32_0 = arith.constant 0 : i32
    %c0_i32_1 = arith.constant 0 : i32
    return %c0_i32, %c0_i32_0 : i32, i32
  }
  func.func @transform_6(%arg0: i32) -> (i32, i32) {
    %c0_i32 = arith.constant 0 : i32
    %c0_i32_0 = arith.constant 0 : i32
    %c0_i32_1 = arith.constant 0 : i32
    return %c0_i32, %c0_i32_0 : i32, i32
  }
  func.func @transform_7(%arg0: i32) -> (i32, i32) {
    %c0_i32 = arith.constant 0 : i32
    %c0_i32_0 = arith.constant 0 : i32
    return %arg0, %c0_i32 : i32, i32
  }
}

</mosaic_0001>

<bundles_post_ra>
// kernel: _cnn_forward_impl.1
= control target key start
LH: loop header
LB: loop body
LE: loop exit
PB: predicated region body
PF: predicated region fallthrough
CT: control target
= control target key end

     0   :  { %vm40_vm0 = vcmask 1041408   ;;  %vm41_vm1 = vcmask 1042432   ;;  %v343_v0 = vmov 0.0   ;;  %v344_v2 = vmov 65535   ;;  %s434_s1 = inlined_call_operand.vmem [shape: bf16[5,80], index: 1, kind: input, shape index: {}]   ;;  %s435_s3 = inlined_call_operand.vmem [shape: bf16[80,64], index: 3, kind: input, shape index: {}]   ;;  %s436_s0 = inlined_call_operand.vmem [shape: bf16[8,5], index: 0, kind: input, shape index: {}]   ;;  %s437_s5 = inlined_call_operand.vmem [shape: bf16[64,4], index: 5, kind: input, shape index: {}]   ;;  %s438_s2 = inlined_call_operand.vmem [shape: f32[1,80], index: 2, kind: input, shape index: {}]   ;;  %s439_s4 = inlined_call_operand.vmem [shape: f32[1,64], index: 4, kind: input, shape index: {}]   ;;  %s440_s6 = inlined_call_operand.vmem [shape: f32[1,4], index: 6, kind: input, shape index: {}]   ;;  %s441_s7 = inlined_call_operand.vmem [shape: f32[8,4], index: 7, kind: output, shape index: {}]  }
   0x1   :  { %299 = vmatprep.subr.bf16.mxu0 %v343_v0  ;;  %v28_v1 = vld [vmem:[%s434_s1] sm:$0x7]  ;;  %v42_v3 = vsel %vm40_vm0, 4294967295, %v344_v2  ;;  %305 = vmatprep.subr.bf16.mxu1 %v343_v0  ;;  %vm345_vm2 = vmmov 0   ;;  %vm36_vm3 = vcmask 39936   ;;  %v335_v8 = vld [vmem:[%s435_s3 + $0x8] sm:$0xff]  }
   0x2   :  { %v43_v4 = vsel %vm41_vm1, %v42_v3, 0  ;;  %301 = vmatprep.mubr.msk.bf16.mxu0 %vm345_vm2, %v343_v0  ;;  %315 = vmatprep.mubr.msk.bf16.mxu1 %vm345_vm2, %v343_v0  ;;  %v334_v6 = vld [vmem:[%s435_s3] sm:$0xff]   ;;  %v336_v9 = vld [vmem:[%s435_s3 + $0x10] sm:$0xff]   ;;  %v337_v10 = vld [vmem:[%s435_s3 + $0x18] sm:$0xff]   ;;  %vm136_vm4 = vcmask 654336   ;;  %vm221_vm5 = vcmask 523264  }
   0x3   :  { %v45_v5 = vand.u32 %v43_v4, %v28_v1  ;;  %v27_v7 = vld [vmem:[%s436_s0] sm:$0xf]  ;;  %306 = vmatpush3.bf16.msra.mxu1 %v334_v6  ;;  %v340_v13 = vld [vmem:[%s437_s5 + $0x8] sm:$0xff]   ;;  %v341_v22 = vld [vmem:[%s437_s5 + $0x10] sm:$0xff]   ;;  %vm265_vm6 = vcmask 31744  }
   0x4   :  { %307 = vmatprep.subr.bf16.mxu1 %v343_v0  ;;  %v338_v11 = vld [vmem:[%s435_s3 + $0x20] sm:$0xff]   ;;  %v342_v23 = vld [vmem:[%s437_s5 + $0x18] sm:$0xff]  }
   0x5   :  { %300 = vmatpush3.bf16.msra.mxu0 %v45_v5  ;;  %v339_v12 = vld [vmem:[%s437_s5] sm:$0xff]  }
   0x6   :  { %319 = vmatprep.subr.bf16.mxu0 %v343_v0  ;;  %v271_v14 = vld [vmem:[%s438_s2] ss:$0 sm:$0xff] }
   0x7   :  { %308 = vmatpush3.bf16.msra.mxu1 %v335_v8  ;;  %v273_v24 = vld [vmem:[%s439_s4] ss:$0 sm:$0xff] }
   0x8   :  { %302 = vmatmul.mubr.msk.bf16.vlgmr.msra.gmra.mrb[0].mxu0 %vm36_vm3, %v27_v7  ;;  %309 = vmatprep.subr.bf16.mxu1 %v343_v0  ;;  %v280_v32 = vld [vmem:[%s440_s6] ss:$0 sm:$0xff] }
   0x9   :  { %327 = vmatprep.mubr.msk.bf16.mxu0 %vm345_vm2, %v343_v0  ;;  %320 = vmatpush3.bf16.msra.mxu0 %v339_v12 }
   0xa   :  { %321 = vmatprep.subr.bf16.mxu0 %v343_v0 }
   0xb   :  { %310 = vmatpush3.bf16.msra.mxu1 %v336_v9 }
   0xc   :  { %311 = vmatprep.subr.bf16.mxu1 %v343_v0 }
   0xd   :  { %322 = vmatpush3.bf16.msra.mxu0 %v340_v13 }
   0xe   :  { %323 = vmatprep.subr.bf16.mxu0 %v343_v0 }
   0xf   :  { %312 = vmatpush3.bf16.msra.mxu1 %v337_v10 }
  0x10   :  { %313 = vmatprep.subr.bf16.mxu1 %v343_v0 }
  0x11   :  { %324 = vmatpush3.bf16.msra.mxu0 %v341_v22 }
  0x12   :  { %325 = vmatprep.subr.bf16.mxu0 %v343_v0 }
  0x13   :  { %314 = vmatpush3.bf16.msra.mxu1 %v338_v11 }
  0x15   :  { %326 = vmatpush3.bf16.msra.mxu0 %v342_v23 }
  0xdb   :  { %v81_v15 = vpop.f32.mrb[0].mxu0 }
  0xdc   :  { %v82_v16 = vadd.f32 %v271_v14, %v81_v15  ;;  %v303_v17 = vpop.f32.mrb[1].mxu0 }
  0xdd   :  { %v84_v18 = vpop.f32.mrb[2].mxu0 }
  0xde   :  { %v87_v19 = vmax.f32 %v82_v16, 0.0  ;;  %v304_v20 = vpop.f32.mrb[3].mxu0 }
  0xe0   :  { %v88_v21 = vpack.c.bf16 %v87_v19, %v87_v19 }
  0xe2   :  { %316 = vmatmul.mubr.msk.bf16.vlgmr.msra.gmra.mrb[0].mxu1 %vm136_vm4, %v88_v21 }
 0x1b5   :  { %v174_v25 = vpop.f32.mrb[0].mxu1 }
 0x1b6   :  { %v175_v26 = vadd.f32 %v273_v24, %v174_v25  ;;  %v317_v27 = vpop.f32.mrb[1].mxu1 }
 0x1b7   :  { %v177_v28 = vpop.f32.mrb[2].mxu1 }
 0x1b8   :  { %v180_v29 = vmax.f32 %v175_v26, 0.0  ;;  %v318_v30 = vpop.f32.mrb[3].mxu1 }
 0x1ba   :  { %v181_v31 = vpack.c.bf16 %v180_v29, %v180_v29 }
 0x1bc   :  { %328 = vmatmul.mubr.msk.bf16.vlgmr.msra.gmra.mrb[4].mxu0 %vm221_vm5, %v181_v31 }
 0x28f   :  { %v259_v33 = vpop.f32.mrb[4].mxu0 }
 0x290   :  { %v260_v34 = vadd.f32 %v280_v32, %v259_v33  ;;  %v329_v35 = vpop.f32.mrb[5].mxu0 }
 0x291   :  { %v262_v36 = vpop.f32.mrb[6].mxu0 }
 0x292   :  { %266 = vst.msk [vmem:[%s441_s7] sm:$0xff] %vm265_vm6, %v260_v34  ;;  %v330_v37 = vpop.f32.mrb[7].mxu0 }

</bundles_post_ra>
